<compile_context>
chip_gen: v5e
topology: v5e:2x2
jax: 0.10.0
libtpu: 0.0.40
codegen_flags: <defaults>
</compile_context>

<pallas_src>
import functools

import jax
import jax.numpy as jnp
from jax.experimental import pallas as pl
from jax.experimental.pallas import tpu as pltpu

LANE = 128


# ----------------------------------------------------------------------------
# Kernel 1: tiled global average pool + squeeze-excite MLP
# ----------------------------------------------------------------------------
def _se_pool_excite_kernel(x_ref, w1_ref, b1_ref, w2_ref, b2_ref,
                           scale_ref, acc_ref, *, inv_hw):
    t = pl.program_id(0)

    @pl.when(t == 0)
    def _():
        acc_ref[...] = jnp.zeros_like(acc_ref)

    # partial spatial sum for this tile (lane reduction on the XLU), f32 acc
    acc_ref[...] += jnp.sum(x_ref[...].astype(jnp.float32), axis=-1)   # [N, C]

    @pl.when(t == pl.num_programs(0) - 1)
    def _():
        pooled = acc_ref[...] * inv_hw                                 # global avg pool
        z = jnp.dot(pooled, w1_ref[...],
                    preferred_element_type=jnp.float32) + b1_ref[...]
        z = jnp.maximum(z, 0.0)                                        # relu
        s = jnp.dot(z, w2_ref[...],
                    preferred_element_type=jnp.float32) + b2_ref[...]
        s = jnp.clip(s + 3.0, 0.0, 6.0) * (1.0 / 6.0)                  # hardsigmoid
        scale_ref[...] = s.astype(scale_ref.dtype)


# ----------------------------------------------------------------------------
# Kernel 2: broadcast multiply x * scale (lane-dense, fully parallel grid)
# ----------------------------------------------------------------------------
def _se_apply_kernel(x_ref, scale_ref, out_ref):
    # x: [1, C, THW] (native dtype), scale: [1, C, 1] (f32) -> broadcast on lanes
    out_ref[...] = (x_ref[...] * scale_ref[...]).astype(out_ref.dtype)


# ----------------------------------------------------------------------------
# Wrapper
# ----------------------------------------------------------------------------
def _pick_spatial_tile(hw_pad, rows, itemsize, max_block_bytes, cap=2048):
    """Largest multiple of 128 dividing hw_pad that keeps rows*tile*itemsize
    under the per-block VMEM budget (capped)."""
    max_lanes = max(LANE, (max_block_bytes // max(rows * itemsize, 1)) // LANE * LANE)
    t = min(hw_pad, max_lanes, cap)
    t = max(LANE, (t // LANE) * LANE)
    while hw_pad % t != 0:
        t -= LANE
    return t


def se_module(x_nchw, conv1_w, conv1_b, conv2_w, conv2_b):
    """SEModule.forward.

    x_nchw:   [N, C, H, W]
    conv1_w:  [Cmid, C, 1, 1], conv1_b: [Cmid]
    conv2_w:  [C, Cmid, 1, 1], conv2_b: [C]
    Returns [N, C, H, W].
    """
    N, C, H, W = x_nchw.shape
    Cmid = conv1_w.shape[0]
    HW = H * W
    HW_pad = pl.cdiv(HW, LANE) * LANE
    itemsize = jnp.dtype(x_nchw.dtype).itemsize

    x = x_nchw.reshape(N, C, HW)                       # free reshape, native dtype
    if HW_pad != HW:
        # zero padding does not perturb the pooled SUM; mean divides by true HW
        x = jnp.pad(x, ((0, 0), (0, 0), (0, HW_pad - HW)))

    # 1x1 convs as dense matrices
    w1 = conv1_w.reshape(Cmid, C).T.astype(jnp.float32)          # [C, Cmid]
    b1 = conv1_b.reshape(1, Cmid).astype(jnp.float32)
    w2 = conv2_w.reshape(C, Cmid).T.astype(jnp.float32)          # [Cmid, C]
    b2 = conv2_b.reshape(1, C).astype(jnp.float32)

    # ---- kernel 1: global average pool (tiled reduction) + excitation ----
    # block is [N, C, THW1]; keep the double-buffered input well under scoped VMEM
    THW1 = _pick_spatial_tile(HW_pad, N * C, itemsize, max_block_bytes=5 << 20)
    grid1 = HW_pad // THW1

    scale = pl.pallas_call(
        functools.partial(_se_pool_excite_kernel, inv_hw=1.0 / float(HW)),
        out_shape=jax.ShapeDtypeStruct((N, C), jnp.float32),
        grid=(grid1,),
        in_specs=[
            pl.BlockSpec((N, C, THW1), lambda t: (0, 0, t)),
            pl.BlockSpec((C, Cmid), lambda t: (0, 0)),
            pl.BlockSpec((1, Cmid), lambda t: (0, 0)),
            pl.BlockSpec((Cmid, C), lambda t: (0, 0)),
            pl.BlockSpec((1, C), lambda t: (0, 0)),
        ],
        out_specs=pl.BlockSpec((N, C), lambda t: (0, 0)),
        scratch_shapes=[pltpu.VMEM((N, C), jnp.float32)],
        compiler_params=pltpu.CompilerParams(
            dimension_semantics=("arbitrary",)),
        cost_estimate=pl.CostEstimate(
            flops=N * C * HW_pad + 4 * N * C * Cmid,
            transcendentals=0,
            bytes_accessed=N * C * HW_pad * itemsize
            + (C * Cmid * 2 + Cmid + C) * 4 + N * C * 4),
    )(x, w1, b1, w2, b2)

    # tiny XLA reshape so the apply kernel reads the scale as [N, C, 1]
    scale3 = scale.reshape(N, C, 1)

    # ---- kernel 2: y = x * scale, tiled over (batch, spatial), parallel grid ----
    # per-block is [1, C, THW2]; in + out double-buffered -> ~4 blocks live
    THW2 = _pick_spatial_tile(HW_pad, C, itemsize, max_block_bytes=3 << 20)
    grid2 = HW_pad // THW2

    y = pl.pallas_call(
        _se_apply_kernel,
        out_shape=jax.ShapeDtypeStruct((N, C, HW_pad), x_nchw.dtype),
        grid=(N, grid2),
        in_specs=[
            pl.BlockSpec((1, C, THW2), lambda n, t: (n, 0, t)),
            pl.BlockSpec((1, C, 1), lambda n, t: (n, 0, 0)),
        ],
        out_specs=pl.BlockSpec((1, C, THW2), lambda n, t: (n, 0, t)),
        compiler_params=pltpu.CompilerParams(
            dimension_semantics=("parallel", "parallel")),
        cost_estimate=pl.CostEstimate(
            flops=N * C * HW_pad,
            transcendentals=0,
            bytes_accessed=2 * N * C * HW_pad * itemsize + N * C * 4),
    )(x, scale3)

    if HW_pad != HW:
        y = y[:, :, :HW]
    return y.reshape(N, C, H, W)


# ----------------------------------------------------------------------------
# Pure-JAX reference (for correctness check)
# ----------------------------------------------------------------------------
def _reference(x_nchw, conv1_w, conv1_b, conv2_w, conv2_b):
    N, C, H, W = x_nchw.shape
    Cmid = conv1_w.shape[0]
    pooled = jnp.mean(x_nchw.astype(jnp.float32), axis=(2, 3))   # [N, C]
    z = pooled @ conv1_w.reshape(Cmid, C).T + conv1_b[None, :]
    z = jnp.maximum(z, 0.0)
    s = z @ conv2_w.reshape(C, Cmid).T + conv2_b[None, :]
    s = jnp.clip(s + 3.0, 0.0, 6.0) / 6.0                        # hardsigmoid
    return x_nchw * s[:, :, None, None]


# ----------------------------------------------------------------------------
if __name__ == "__main__":
    # SEModule(channel=16, reduction=4) on a small input
    N, C, H, W = 2, 16, 32, 32
    reduction = 4
    Cmid = C // reduction

    key = jax.random.PRNGKey(0)
    kx, k1, k2 = jax.random.split(key, 3)

    x = jax.random.normal(kx, (N, C, H, W), dtype=jnp.float32)
    # module init: normal_() on conv weights, constant_(0) on biases
    conv1_w = jax.random.normal(k1, (Cmid, C, 1, 1), dtype=jnp.float32)
    conv1_b = jnp.zeros((Cmid,), dtype=jnp.float32)
    conv2_w = jax.random.normal(k2, (C, Cmid, 1, 1), dtype=jnp.float32)
    conv2_b = jnp.zeros((C,), dtype=jnp.float32)

    out = se_module(x, conv1_w, conv1_b, conv2_w, conv2_b)
    out = jax.block_until_ready(out)

    ref = _reference(x, conv1_w, conv1_b, conv2_w, conv2_b)
    assert out.shape == (N, C, H, W)
    err = float(jnp.max(jnp.abs(out - ref)))
    assert err < 1e-4, f"mismatch vs pure-JAX reference: {err}"

    print("KERNEL_OK")
</pallas_src>

<mosaic_0001>
module attributes {stable_mosaic.version = 11 : i64} {
  func.func @_se_pool_excite_kernel(%arg0: i32, %arg1: memref<2x16x1024xf32, #tpu.memory_space<vmem>>, %arg2: memref<16x4xf32, #tpu.memory_space<vmem>>, %arg3: memref<1x4xf32, #tpu.memory_space<vmem>>, %arg4: memref<4x16xf32, #tpu.memory_space<vmem>>, %arg5: memref<1x16xf32, #tpu.memory_space<vmem>>, %arg6: memref<2x16xf32, #tpu.memory_space<vmem>>, %arg7: memref<2x16xf32, #tpu.memory_space<vmem>>) attributes {dimension_semantics = [#tpu.dimension_semantics<arbitrary>], iteration_bounds = array<i64: 1>, scalar_prefetch = 0 : i64, scratch_operands = 1 : i64, tpu.core_type = #tpu.core_type<tc>, window_params = [{transform_indices = @transform_0, window_bounds = array<i64: 2, 16, 1024>}, {pipeline_mode = #tpu.pipeline_mode<synchronous>, transform_indices = @transform_1, window_bounds = array<i64: 16, 4>}, {pipeline_mode = #tpu.pipeline_mode<synchronous>, transform_indices = @transform_2, window_bounds = array<i64: 1, 4>}, {pipeline_mode = #tpu.pipeline_mode<synchronous>, transform_indices = @transform_3, window_bounds = array<i64: 4, 16>}, {pipeline_mode = #tpu.pipeline_mode<synchronous>, transform_indices = @transform_4, window_bounds = array<i64: 1, 16>}, {pipeline_mode = #tpu.pipeline_mode<synchronous>, transform_indices = @transform_5, window_bounds = array<i64: 2, 16>}]} {
    %c0_i32 = arith.constant 0 : i32
    %0 = arith.cmpi eq, %arg0, %c0_i32 : i32
    %1 = arith.extui %0 : i1 to i32
    %c0_i32_0 = arith.constant 0 : i32
    %2 = arith.cmpi ne, %1, %c0_i32_0 : i32
    scf.if %2 {
      %cst_9 = arith.constant 0.000000e+00 : f32
      %11 = vector.broadcast %cst_9 : f32 to vector<2x16xf32>
      %c0_10 = arith.constant 0 : index
      %c0_11 = arith.constant 0 : index
      %12 = vector.load %arg7[%c0_10, %c0_11] : memref<2x16xf32, #tpu.memory_space<vmem>>, vector<2x16xf32>
      tpu.vector_store %arg7[%c0_10, %c0_11], %11 {strides = array<i32>} : memref<2x16xf32, #tpu.memory_space<vmem>>, vector<2x16xf32>,
    } else {
    }
    %c0 = arith.constant 0 : index
    %c0_1 = arith.constant 0 : index
    %3 = vector.load %arg7[%c0, %c0_1] : memref<2x16xf32, #tpu.memory_space<vmem>>, vector<2x16xf32>
    %c0_2 = arith.constant 0 : index
    %c0_3 = arith.constant 0 : index
    %c0_4 = arith.constant 0 : index
    %4 = vector.load %arg1[%c0_2, %c0_3, %c0_4] : memref<2x16x1024xf32, #tpu.memory_space<vmem>>, vector<2x16x1024xf32>
    %cst = arith.constant dense<0.000000e+00> : vector<2x16xf32>
    %5 = vector.multi_reduction <add>, %4, %cst [2] : vector<2x16x1024xf32> to vector<2x16xf32>
    %6 = arith.addf %3, %5 : vector<2x16xf32>
    %c0_5 = arith.constant 0 : index
    %c0_6 = arith.constant 0 : index
    %7 = vector.load %arg7[%c0_5, %c0_6] : memref<2x16xf32, #tpu.memory_space<vmem>>, vector<2x16xf32>
    tpu.vector_store %arg7[%c0_5, %c0_6], %6 {strides = array<i32>} : memref<2x16xf32, #tpu.memory_space<vmem>>, vector<2x16xf32>,
    %c0_i32_7 = arith.constant 0 : i32
    %8 = arith.cmpi eq, %arg0, %c0_i32_7 : i32
    %9 = arith.extui %8 : i1 to i32
    %c0_i32_8 = arith.constant 0 : i32
    %10 = arith.cmpi ne, %9, %c0_i32_8 : i32
    scf.if %10 {
      %c0_9 = arith.constant 0 : index
      %c0_10 = arith.constant 0 : index
      %11 = vector.load %arg7[%c0_9, %c0_10] : memref<2x16xf32, #tpu.memory_space<vmem>>, vector<2x16xf32>
      %cst_11 = arith.constant 9.765625E-4 : f32
      %12 = vector.broadcast %cst_11 : f32 to vector<2x16xf32>
      %13 = arith.mulf %11, %12 : vector<2x16xf32>
      %c0_12 = arith.constant 0 : index
      %c0_13 = arith.constant 0 : index
      %14 = vector.load %arg2[%c0_12, %c0_13] : memref<16x4xf32, #tpu.memory_space<vmem>>, vector<16x4xf32>
      %cst_14 = arith.constant dense<0.000000e+00> : vector<2x4xf32>
      %15 = tpu.matmul %13, %14, %cst_14 {dimension_numbers = #tpu.dot_dimension_numbers<[1], [0], [0], [1], [0, 0, 1, 1], [], []>} : vector<2x16xf32>, vector<16x4xf32>, vector<2x4xf32> -> vector<2x4xf32>
      %c0_15 = arith.constant 0 : index
      %c0_16 = arith.constant 0 : index
      %16 = vector.load %arg3[%c0_15, %c0_16] : memref<1x4xf32, #tpu.memory_space<vmem>>, vector<1x4xf32>
      %17 = vector.broadcast %16 : vector<1x4xf32> to vector<2x4xf32>
      %18 = arith.addf %15, %17 : vector<2x4xf32>
      %cst_17 = arith.constant 0.000000e+00 : f32
      %19 = vector.broadcast %cst_17 : f32 to vector<2x4xf32>
      %20 = arith.maximumf %18, %19 : vector<2x4xf32>
      %c0_18 = arith.constant 0 : index
      %c0_19 = arith.constant 0 : index
      %21 = vector.load %arg4[%c0_18, %c0_19] : memref<4x16xf32, #tpu.memory_space<vmem>>, vector<4x16xf32>
      %cst_20 = arith.constant dense<0.000000e+00> : vector<2x16xf32>
      %22 = tpu.matmul %20, %21, %cst_20 {dimension_numbers = #tpu.dot_dimension_numbers<[1], [0], [0], [1], [0, 0, 1, 1], [], []>} : vector<2x4xf32>, vector<4x16xf32>, vector<2x16xf32> -> vector<2x16xf32>
      %c0_21 = arith.constant 0 : index
      %c0_22 = arith.constant 0 : index
      %23 = vector.load %arg5[%c0_21, %c0_22] : memref<1x16xf32, #tpu.memory_space<vmem>>, vector<1x16xf32>
      %24 = vector.broadcast %23 : vector<1x16xf32> to vector<2x16xf32>
      %25 = arith.addf %22, %24 : vector<2x16xf32>
      %cst_23 = arith.constant 3.000000e+00 : f32
      %26 = vector.broadcast %cst_23 : f32 to vector<2x16xf32>
      %27 = arith.addf %25, %26 : vector<2x16xf32>
      %cst_24 = arith.constant 0.000000e+00 : f32
      %cst_25 = arith.constant 6.000000e+00 : f32
      %28 = vector.broadcast %cst_24 : f32 to vector<2x16xf32>
      %29 = arith.maximumf %28, %27 : vector<2x16xf32>
      %30 = vector.broadcast %cst_25 : f32 to vector<2x16xf32>
      %31 = arith.minimumf %30, %29 : vector<2x16xf32>
      %cst_26 = arith.constant 0.166666672 : f32
      %32 = vector.broadcast %cst_26 : f32 to vector<2x16xf32>
      %33 = arith.mulf %31, %32 : vector<2x16xf32>
      %c0_27 = arith.constant 0 : index
      %c0_28 = arith.constant 0 : index
      %34 = vector.load %arg6[%c0_27, %c0_28] : memref<2x16xf32, #tpu.memory_space<vmem>>, vector<2x16xf32>
      tpu.vector_store %arg6[%c0_27, %c0_28], %33 {strides = array<i32>} : memref<2x16xf32, #tpu.memory_space<vmem>>, vector<2x16xf32>,
    } else {
    }
    return
  }
  func.func @transform_0(%arg0: i32) -> (i32, i32, i32) {
    %c0_i32 = arith.constant 0 : i32
    %c0_i32_0 = arith.constant 0 : i32
    %c0_i32_1 = arith.constant 0 : i32
    return %c0_i32, %c0_i32_0, %arg0 : i32, i32, i32
  }
  func.func @transform_1(%arg0: i32) -> (i32, i32) {
    %c0_i32 = arith.constant 0 : i32
    %c0_i32_0 = arith.constant 0 : i32
    %c0_i32_1 = arith.constant 0 : i32
    return %c0_i32, %c0_i32_0 : i32, i32
  }
  func.func @transform_2(%arg0: i32) -> (i32, i32) {
    %c0_i32 = arith.constant 0 : i32
    %c0_i32_0 = arith.constant 0 : i32
    %c0_i32_1 = arith.constant 0 : i32
    return %c0_i32, %c0_i32_0 : i32, i32
  }
  func.func @transform_3(%arg0: i32) -> (i32, i32) {
    %c0_i32 = arith.constant 0 : i32
    %c0_i32_0 = arith.constant 0 : i32
    %c0_i32_1 = arith.constant 0 : i32
    return %c0_i32, %c0_i32_0 : i32, i32
  }
  func.func @transform_4(%arg0: i32) -> (i32, i32) {
    %c0_i32 = arith.constant 0 : i32
    %c0_i32_0 = arith.constant 0 : i32
    %c0_i32_1 = arith.constant 0 : i32
    return %c0_i32, %c0_i32_0 : i32, i32
  }
  func.func @transform_5(%arg0: i32) -> (i32, i32) {
    %c0_i32 = arith.constant 0 : i32
    %c0_i32_0 = arith.constant 0 : i32
    %c0_i32_1 = arith.constant 0 : i32
    return %c0_i32, %c0_i32_0 : i32, i32
  }
}

</mosaic_0001>

<bundles_post_ra>
// kernel: tpu_custom_call.1
= control target key start
LH: loop header
LB: loop body
LE: loop exit
PB: predicated region body
PF: predicated region fallthrough
CT: control target
= control target key end

     0   :  { %10 = vsyncpa [#allocation4], 0  ;;  %s344_s0 = inlined_call_operand.hbm [shape: f32[2,16,1024], index: 0, kind: input, shape index: {}]   ;;  %s345_s1 = inlined_call_operand.vmem [shape: f32[16,4], index: 1, kind: input, shape index: {}]   ;;  %s346_s2 = inlined_call_operand.vmem [shape: f32[1,4], index: 2, kind: input, shape index: {}]   ;;  %s347_s3 = inlined_call_operand.vmem [shape: f32[4,16], index: 3, kind: input, shape index: {}]   ;;  %s348_s4 = inlined_call_operand.vmem [shape: f32[1,16], index: 4, kind: input, shape index: {}]   ;;  %s349_s5 = inlined_call_operand.hbm [shape: f32[2,16], index: 5, kind: output, shape index: {}]  }
   0x1   :  { %11 = vsyncpa [#allocation5], 0  ;;  %s16_s20 = sshll.u32 %s344_s0, 4  ;;  %s285_s21 = smov [#allocation3]   ;;  %s17_s20 = int_to_ptr.hbm [resolvable:$true] %s16_s20 }
   0x2   :  { %s18_s22 = sshll.u32 %s285_s21, 4  ;;  %s286_s23 = smov 1024   ;;  %s19_s22 = int_to_ptr.vmem [resolvable:$true] %s18_s22 }
   0x3   :  { %s287_s24 = smov 64  }
   0x4   :  { %24 = dma.hbm_to_vmem [thread:$0]  %s17_s20, 4096, %s19_s22, [#allocation4], %s286_s23, %s286_s23, %s287_s24  }
   0x5   :  { %281 = dma.done.wait [#allocation4], 4096  }
   0x6   :  { %282 = vsyncadd [#allocation4], 4294963200  ;;  %v60_v0 = vld [vmem:[#allocation3 + $0x80] sm:$0xff]  ;;  %v61_v1 = vld [vmem:[#allocation3 + $0x88] sm:$0xff]  ;;  %vm41_vm0 = vcmask 123904   ;;  %v288_v60 = vmov 0.0   ;;  %v116_v63 = vlaneseq }
   0x7   :  { %v62_v2 = vld [vmem:[#allocation3 + $0x90] sm:$0xff]  ;;  %v94_v3 = vadd.f32 %v61_v1, %v60_v0  ;;  %v63_v4 = vld [vmem:[#allocation3 + $0x98] sm:$0xff]  ;;  %v44_v5 = vld [vmem:[#allocation3] sm:$0xff]  ;;  %42 = vst.msk [vmem:[#allocation2] sm:$0x3] %vm41_vm0, %v288_v60  ;;  %vm121_vm1 = vcmask 130112  }
   0x8   :  { %v45_v7 = vld [vmem:[#allocation3 + $0x8] sm:$0xff]  ;;  %v46_v8 = vld [vmem:[#allocation3 + $0x10] sm:$0xff]  ;;  %v64_v9 = vld [vmem:[#allocation3 + $0xa0] sm:$0xff]  ;;  %v117_v1 = vand.u32 127, %v116_v63  ;;  %vm126_vm2 = vcmask 1041409   ;;  %vm143_vm3 = vcmask 130048  }
   0x9   :  { %v95_v6 = vadd.f32 %v94_v3, %v62_v2  ;;  %v76_v10 = vadd.f32 %v45_v7, %v44_v5  ;;  %v47_v12 = vld [vmem:[#allocation3 + $0x18] sm:$0xff]  ;;  %v68_v13 = vld [vmem:[#allocation3 + $0xc0] sm:$0xff]  ;;  %v69_v14 = vld [vmem:[#allocation3 + $0xc8] sm:$0xff]  ;;  %vm177_vm4 = vcmask 1043456   ;;  %vm173_vm5 = vcmask 31744   ;;  %s213_s11 = sshll.u32 %s349_s5, 4  ;;  %s214_s11 = int_to_ptr.hbm [resolvable:$true] %s213_s11 }
   0xa   :  { %v65_v15 = vld [vmem:[#allocation3 + $0xa8] sm:$0xff]  ;;  %v70_v17 = vld [vmem:[#allocation3 + $0xd0] sm:$0xff]  ;;  %v103_v18 = vadd.f32 %v69_v14, %v68_v13  ;;  %v48_v21 = vld [vmem:[#allocation3 + $0x20] sm:$0xff]  ;;  %v119_v3 = vadd.s32 4294967288, %v117_v1 }
   0xb   :  { %v96_v11 = vadd.f32 %v95_v6, %v63_v4  ;;  %v77_v16 = vadd.f32 %v76_v10, %v46_v8  ;;  %v66_v19 = vld [vmem:[#allocation3 + $0xb0] sm:$0xff]  ;;  %v71_v22 = vld [vmem:[#allocation3 + $0xd8] sm:$0xff]  ;;  %v52_v25 = vld [vmem:[#allocation3 + $0x40] sm:$0xff] }
   0xc   :  { %v104_v24 = vadd.f32 %v103_v18, %v70_v17  ;;  %v53_v26 = vld [vmem:[#allocation3 + $0x48] sm:$0xff]  ;;  %v54_v27 = vld [vmem:[#allocation3 + $0x50] sm:$0xff]  ;;  %v72_v30 = vld [vmem:[#allocation3 + $0xe0] sm:$0xff] }
   0xd   :  { %v97_v20 = vadd.f32 %v96_v11, %v64_v9  ;;  %v78_v23 = vadd.f32 %v77_v16, %v47_v12  ;;  %v49_v29 = vld [vmem:[#allocation3 + $0x28] sm:$0xff]  ;;  %v85_v31 = vadd.f32 %v53_v26, %v52_v25  ;;  %v67_v32 = vld [vmem:[#allocation3 + $0xb8] sm:$0xff]  ;;  %v50_v37 = vld [vmem:[#allocation3 + $0x30] sm:$0xff] }
   0xe   :  { %v105_v34 = vadd.f32 %v104_v24, %v71_v22  ;;  %v55_v35 = vld [vmem:[#allocation3 + $0x58] sm:$0xff]  ;;  %v73_v38 = vld [vmem:[#allocation3 + $0xe8] sm:$0xff]  ;;  %v56_v42 = vld [vmem:[#allocation3 + $0x60] sm:$0xff] }
   0xf   :  { %v98_v28 = vadd.f32 %v97_v20, %v65_v15  ;;  %v79_v33 = vadd.f32 %v78_v23, %v48_v21  ;;  %v86_v39 = vadd.f32 %v85_v31, %v54_v27  ;;  %v51_v44 = vld [vmem:[#allocation3 + $0x38] sm:$0xff]  ;;  %v74_v45 = vld [vmem:[#allocation3 + $0xf0] sm:$0xff]  ;;  %v57_v49 = vld [vmem:[#allocation3 + $0x68] sm:$0xff] }
  0x10   :  { %v106_v41 = vadd.f32 %v105_v34, %v72_v30  ;;  %v75_v52 = vld [vmem:[#allocation3 + $0xf8] sm:$0xff]  ;;  %v58_v54 = vld [vmem:[#allocation3 + $0x70] sm:$0xff]  ;;  %v138_v61 = vld [vmem:[%s345_s1 + $0x8] sm:$0xff] }
  0x11   :  { %v99_v36 = vadd.f32 %v98_v28, %v66_v19  ;;  %v80_v40 = vadd.f32 %v79_v33, %v49_v29  ;;  %v87_v46 = vadd.f32 %v86_v39, %v55_v35  ;;  %v59_v57 = vld [vmem:[#allocation3 + $0x78] sm:$0xff]  ;;  %161 = vmatpush.msra.mxu0 %v138_v61 }
  0x12   :  { %v107_v48 = vadd.f32 %v106_v41, %v73_v38  ;;  %v137_v62 = vld [vmem:[%s345_s1] sm:$0xff] }
  0x13   :  { %v100_v43 = vadd.f32 %v99_v36, %v67_v32  ;;  %v81_v47 = vadd.f32 %v80_v40, %v50_v37  ;;  %v88_v50 = vadd.f32 %v87_v46, %v56_v42  ;;  %162 = vmatpush.msra.mxu0 %v137_v62  ;;  %v43_v11 = vld [vmem:[#allocation2] sm:$0x3] }
  0x14   :  { %v108_v53 = vadd.f32 %v107_v48, %v74_v45  ;;  %v168_v17 = vld [vmem:[%s347_s3] sm:$0xf]  ;;  %s289_s3 = smov [#allocation6]  }
  0x15   :  { %101 = vadd.xlane.f32.xlu1 %v100_v43  ;;  %v82_v51 = vadd.f32 %v81_v47, %v51_v44  ;;  %v89_v55 = vadd.f32 %v88_v50, %v57_v49  ;;  %224 = vmatpush.msk.msra.mxu1 %vm177_vm4, %v168_v17  ;;  %v231_v18 = vld [vmem:[%s346_s2] ss:$0 sm:$0xff]  ;;  %s211_s8 = sshll.u32 %s289_s3, 4  ;;  %s212_s8 = int_to_ptr.vmem [resolvable:$true] %s211_s8 }
  0x16   :  { %v109_v56 = vadd.f32 %v108_v53, %v75_v52  ;;  %v232_v22 = vld [vmem:[%s348_s4] ss:$0 sm:$0xff] }
  0x17   :  { %83 = vadd.xlane.f32.xlu0 %v82_v51  ;;  %v90_v58 = vadd.f32 %v89_v55, %v58_v54 }
  0x19   :  { %v91_v59 = vadd.f32 %v90_v58, %v59_v57 }
  0x1d   :  { %110 = vadd.xlane.f32.xlu1 %v109_v56 }
  0x1f   :  { %92 = vadd.xlane.f32.xlu0 %v91_v59 }
  0x88   :  { %v102_v0 = vpop.xlane.xlu1 %101 }
  0x89   :  { %v123_v6 = vperm.slane %v102_v0, %v117_v1 }
  0x8a   :  { %v84_v2 = vpop.xlane.xlu0 %83 }
  0x8b   :  { %v118_v8 = vperm.slane %v84_v2, %v117_v1 }
  0x90   :  { %v111_v4 = vpop.xlane.xlu1 %110 }
  0x91   :  { %v124_v5 = vperm.slane %v111_v4, %v119_v3 }
  0x92   :  { %v93_v7 = vpop.xlane.xlu0 %92 }
  0x93   :  { %v125_v9 = vsel %vm121_vm1, %v124_v5, %v123_v6  ;;  %v120_v10 = vperm.slane %v93_v7, %v119_v3 }
  0x95   :  { %v122_v12 = vsel %vm121_vm1, %v120_v10, %v118_v8 }
  0x96   :  { %v127_v13 = vsel %vm126_vm2, %v125_v9, %v122_v12 }
  0x97   :  { %v129_v14 = vadd.f32 %v127_v13, %v43_v11 }
  0x99   :  { %131 = vst.msk [vmem:[#allocation2] sm:$0x3] %vm41_vm0, %v129_v14 }
  0xa0   :  { %v135_v15 = vld [vmem:[#allocation2] sm:$0x3] }
  0xa1   :  { %v136_v16 = vmul.f32 0.0009765625, %v135_v15 }
  0xa3   :  { %223 = vmatmul.msk.f32.vlgmr.msra.gmra.mxu0 %vm143_vm3, %v136_v16 }
 0x120   :  { %v164_v19 = vpop.f32.mrf.mxu0 }
 0x121   :  { %v165_v20 = vadd.f32 %v231_v18, %v164_v19 }
 0x123   :  { %v167_v21 = vmax.f32 %v165_v20, 0.0 }
 0x125   :  { %225 = vmatmul.msk.f32.vlgmr.msra.gmra.mxu1 %vm173_vm5, %v167_v21 }
 0x1a2   :  { %v198_v23 = vpop.f32.mrf.mxu1 }
 0x1a3   :  { %v199_v24 = vadd.f32 %v232_v22, %v198_v23 }
 0x1a5   :  { %v201_v25 = vadd.f32 3.0, %v199_v24 }
 0x1a7   :  { %v202_v26 = vmax.f32 %v201_v25, 0.0 }
 0x1a9   :  { %v203_v27 = vmin.f32 %v202_v26, 6.0 }
 0x1ab   :  { %v204_v28 = vmul.f32 0.16666667, %v203_v27 }
 0x1ad   :  { %205 = vst.msk [vmem:[#allocation6] sm:$0x3] %vm41_vm0, %v204_v28 }
 0x1ae   :  { %216 = dma.vmem_to_hbm [thread:$0]  %s212_s8, 32, %s214_s11, [#allocation5]  }
 0x1af   :  { %283 = dma.done.wait [#allocation5], 32  }
 0x1b0   :  { %284 = vsyncadd [#allocation5], 4294967264 }
 0x1b1   :  { %221 = vsyncpa [#allocation4], 1 }
 0x1b2   :  { %222 = vsyncpa [#allocation5], 1 }

</bundles_post_ra>
